<compile_context>
chip_gen: v6e
topology: v6e:2x2x1
jax: 0.10.0
libtpu: 0.0.40
codegen_flags: <defaults>
</compile_context>

<pallas_src>
import functools

import jax
import jax.numpy as jnp
from jax.experimental import pallas as pl
from jax.experimental.pallas import tpu as pltpu

NEG_SLOPE = 0.01     # F.leaky_relu default
HIDDEN = 128         # fc_1 width (= 64 state-branch + 64 action-branch)


def _leaky_relu(v):
    # identical to where(v>=0, v, slope*v) for 0 < slope < 1
    return jnp.maximum(v, NEG_SLOPE * v)


def _round_up(x, m):
    return ((x + m - 1) // m) * m


def qnetwork_kernel(x_ref, a_ref, ws_ref, wa_ref, bin_ref, w1_ref, b1_ref,
                    wo_ref, bo_ref, out_ref, *, mxu_dtype):
    # h = leaky_relu(x @ [Ws|0] + a @ [0|Wa] + [bs|ba])  == concat(h1, h2)
    h = _leaky_relu(
        jnp.dot(x_ref[...], ws_ref[...], preferred_element_type=jnp.float32)
        + jnp.dot(a_ref[...], wa_ref[...], preferred_element_type=jnp.float32)
        + bin_ref[...])
    # q = leaky_relu(h @ W1 + b1)
    q = _leaky_relu(
        jnp.dot(h.astype(mxu_dtype), w1_ref[...],
                preferred_element_type=jnp.float32)
        + b1_ref[...])
    # out = q @ Wout + bout   (natural action_dim-wide store)
    out_ref[...] = (
        jnp.dot(q.astype(mxu_dtype), wo_ref[...],
                preferred_element_type=jnp.float32)
        + bo_ref[...]).astype(out_ref.dtype)


def pack_params(params, mxu_dtype=jnp.bfloat16):
    """Pack/pad/cast weights ONCE per parameter update (not per forward).

    ws_pad = [Ws | 0] (state_dim, 128), wa_pad = [0 | Wa] (action_dim, 128):
    x @ ws_pad + a @ wa_pad == concat(x @ Ws, a @ Wa).
    """
    state_dim = params["ws"].shape[0]
    action_dim = params["wa"].shape[0]
    ws_pad = jnp.zeros((state_dim, HIDDEN), jnp.float32).at[:, :64].set(params["ws"])
    wa_pad = jnp.zeros((action_dim, HIDDEN), jnp.float32).at[:, 64:].set(params["wa"])
    b_in = jnp.concatenate([params["bs"], params["ba"]], axis=-1)       # (1, 128)
    return {
        "ws_pad": ws_pad.astype(mxu_dtype),
        "wa_pad": wa_pad.astype(mxu_dtype),
        "b_in": b_in.astype(jnp.float32),
        "w1": params["w1"].astype(mxu_dtype),
        "b1": params["b1"].astype(jnp.float32),
        "wo": params["wo"].astype(mxu_dtype),      # (128, action_dim), no pad
        "bo": params["bo"].astype(jnp.float32),    # (1, action_dim)
    }


def qnetwork_forward(x, a, packed, *, block_b=2048):
    """x: (B, state_dim), a: (B, action_dim) -> (B, action_dim) float32."""
    B = x.shape[0]
    state_dim = packed["ws_pad"].shape[0]
    action_dim = packed["wa_pad"].shape[0]
    mxu_dtype = packed["ws_pad"].dtype

    # Batch tiling: tiles as large as possible (amortize ~0.35us/step fixed
    # overhead; per-buffer VMEM is tiny even at 2048 rows), but aim for >= 2
    # tiles when B allows so the "parallel" axis can shard across v7x's 2 TCs.
    if B <= 16:
        tile_b = _round_up(max(B, 1), 8)
    else:
        tile_b = min(block_b, _round_up(pl.cdiv(B, 2), 8))
    tile_b = max(8, tile_b)
    n_blocks = pl.cdiv(B, tile_b)
    b_pad = n_blocks * tile_b

    # Cast activations to MXU dtype in the wrapper (fuses with the row pad);
    # no per-tile input cast in the kernel, and half the DMA bytes for bf16.
    x = x.astype(mxu_dtype)
    a = a.astype(mxu_dtype)
    if b_pad != B:
        x = jnp.pad(x, ((0, b_pad - B), (0, 0)))
        a = jnp.pad(a, ((0, b_pad - B), (0, 0)))

    row = lambda i: (i, 0)
    const = lambda i: (0, 0)                       # weights VMEM-resident
    grid_spec = pltpu.PrefetchScalarGridSpec(
        num_scalar_prefetch=0,
        grid=(n_blocks,),
        in_specs=[
            pl.BlockSpec((tile_b, state_dim), row),      # x tile
            pl.BlockSpec((tile_b, action_dim), row),     # a tile
            pl.BlockSpec((state_dim, HIDDEN), const),    # [Ws | 0]
            pl.BlockSpec((action_dim, HIDDEN), const),   # [0 | Wa]
            pl.BlockSpec((1, HIDDEN), const),            # [bs | ba]
            pl.BlockSpec((HIDDEN, HIDDEN), const),       # W1
            pl.BlockSpec((1, HIDDEN), const),            # b1
            pl.BlockSpec((HIDDEN, action_dim), const),   # Wout
            pl.BlockSpec((1, action_dim), const),        # bout
        ],
        out_specs=pl.BlockSpec((tile_b, action_dim), row),
    )

    out = pl.pallas_call(
        functools.partial(qnetwork_kernel, mxu_dtype=mxu_dtype),
        out_shape=jax.ShapeDtypeStruct((b_pad, action_dim), jnp.float32),
        grid_spec=grid_spec,
        compiler_params=pltpu.CompilerParams(
            dimension_semantics=("parallel",)),
    )(x, a, packed["ws_pad"], packed["wa_pad"], packed["b_in"],
      packed["w1"], packed["b1"], packed["wo"], packed["bo"])

    return out if b_pad == B else out[:B]


def init_params(key, state_dim, action_dim):
    """PyTorch-style Linear init: U(-1/sqrt(fan_in), 1/sqrt(fan_in)).

    Weights stored transposed as (in_features, out_features); biases as (1, out).
    """
    def linear(k, fan_in, fan_out):
        kw, kb = jax.random.split(k)
        bound = 1.0 / jnp.sqrt(fan_in)
        w = jax.random.uniform(kw, (fan_in, fan_out), jnp.float32, -bound, bound)
        b = jax.random.uniform(kb, (1, fan_out), jnp.float32, -bound, bound)
        return w, b

    k1, k2, k3, k4 = jax.random.split(key, 4)
    ws, bs = linear(k1, state_dim, 64)    # fc_s
    wa, ba = linear(k2, action_dim, 64)   # fc_a
    w1, b1 = linear(k3, 128, 128)         # fc_1
    wo, bo = linear(k4, 128, action_dim)  # fc_out
    return {"ws": ws, "bs": bs, "wa": wa, "ba": ba,
            "w1": w1, "b1": b1, "wo": wo, "bo": bo}


def qnetwork_ref(x, a, params):
    """Pure-JAX reference of the PyTorch forward, for verification."""
    h1 = jax.nn.leaky_relu(x @ params["ws"] + params["bs"], NEG_SLOPE)
    h2 = jax.nn.leaky_relu(a @ params["wa"] + params["ba"], NEG_SLOPE)
    cat = jnp.concatenate([h1, h2], axis=-1)
    q = jax.nn.leaky_relu(cat @ params["w1"] + params["b1"], NEG_SLOPE)
    return q @ params["wo"] + params["bo"]


# TODO(synk): the Adam optimizer attached to the PyTorch module is training
# state, not part of the forward pass, and is intentionally not translated.

if __name__ == "__main__":
    state_dim, action_dim = 16, 4
    key = jax.random.PRNGKey(0)
    kx, ka, kp, kx2, ka2 = jax.random.split(key, 5)
    params = init_params(kp, state_dim, action_dim)

    # Pack weights once (per parameter update), for both MXU operand dtypes.
    packed_f32 = pack_params(params, mxu_dtype=jnp.float32)   # exact path
    packed_bf16 = pack_params(params)                         # default (bf16 MXU)

    # --- tiny-batch case (B=2 -> single 8-row tile) --------------------------
    B = 2
    x = jax.random.normal(kx, (B, state_dim), jnp.float32)
    a = jax.random.normal(ka, (B, action_dim), jnp.float32)
    ref = qnetwork_ref(x, a, params)

    out = jax.block_until_ready(qnetwork_forward(x, a, packed_f32))
    assert out.shape == (B, action_dim)
    assert jnp.allclose(out, ref, atol=1e-5, rtol=1e-5)

    out_bf16 = jax.block_until_ready(qnetwork_forward(x, a, packed_bf16))
    assert out_bf16.shape == (B, action_dim)
    assert jnp.allclose(out_bf16, ref, atol=5e-2, rtol=5e-2)   # bf16 operand rounding

    # --- multi-tile case (B=40, block_b=16 -> grid of 3, ragged pad 40->48) --
    B2 = 40
    x2 = jax.random.normal(kx2, (B2, state_dim), jnp.float32)
    a2 = jax.random.normal(ka2, (B2, action_dim), jnp.float32)
    ref2 = qnetwork_ref(x2, a2, params)

    out2 = jax.block_until_ready(qnetwork_forward(x2, a2, packed_f32, block_b=16))
    assert out2.shape == (B2, action_dim)
    assert jnp.allclose(out2, ref2, atol=1e-5, rtol=1e-5)

    out2_bf16 = jax.block_until_ready(qnetwork_forward(x2, a2, packed_bf16, block_b=16))
    assert out2_bf16.shape == (B2, action_dim)
    assert jnp.allclose(out2_bf16, ref2, atol=5e-2, rtol=5e-2)

    print("KERNEL_OK")
</pallas_src>

<mosaic_0001>
module attributes {stable_mosaic.version = 11 : i64} {
  func.func @qnetwork_kernel(%arg0: i32, %arg1: memref<8x16xf32, #tpu.memory_space<vmem>>, %arg2: memref<8x4xf32, #tpu.memory_space<vmem>>, %arg3: memref<16x128xf32, #tpu.memory_space<vmem>>, %arg4: memref<4x128xf32, #tpu.memory_space<vmem>>, %arg5: memref<1x128xf32, #tpu.memory_space<vmem>>, %arg6: memref<128x128xf32, #tpu.memory_space<vmem>>, %arg7: memref<1x128xf32, #tpu.memory_space<vmem>>, %arg8: memref<128x4xf32, #tpu.memory_space<vmem>>, %arg9: memref<1x4xf32, #tpu.memory_space<vmem>>, %arg10: memref<8x4xf32, #tpu.memory_space<vmem>>) attributes {dimension_semantics = [#tpu.dimension_semantics<parallel>], iteration_bounds = array<i64: 1>, scalar_prefetch = 0 : i64, scratch_operands = 0 : i64, tpu.core_type = #tpu.core_type<tc>, window_params = [{transform_indices = @transform_0, window_bounds = array<i64: 8, 16>}, {transform_indices = @transform_1, window_bounds = array<i64: 8, 4>}, {pipeline_mode = #tpu.pipeline_mode<synchronous>, transform_indices = @transform_2, window_bounds = array<i64: 16, 128>}, {pipeline_mode = #tpu.pipeline_mode<synchronous>, transform_indices = @transform_3, window_bounds = array<i64: 4, 128>}, {pipeline_mode = #tpu.pipeline_mode<synchronous>, transform_indices = @transform_4, window_bounds = array<i64: 1, 128>}, {pipeline_mode = #tpu.pipeline_mode<synchronous>, transform_indices = @transform_5, window_bounds = array<i64: 128, 128>}, {pipeline_mode = #tpu.pipeline_mode<synchronous>, transform_indices = @transform_6, window_bounds = array<i64: 1, 128>}, {pipeline_mode = #tpu.pipeline_mode<synchronous>, transform_indices = @transform_7, window_bounds = array<i64: 128, 4>}, {pipeline_mode = #tpu.pipeline_mode<synchronous>, transform_indices = @transform_8, window_bounds = array<i64: 1, 4>}, {transform_indices = @transform_9, window_bounds = array<i64: 8, 4>}]} {
    %c0 = arith.constant 0 : index
    %c0_0 = arith.constant 0 : index
    %0 = vector.load %arg1[%c0, %c0_0] : memref<8x16xf32, #tpu.memory_space<vmem>>, vector<8x16xf32>
    %c0_1 = arith.constant 0 : index
    %c0_2 = arith.constant 0 : index
    %1 = vector.load %arg3[%c0_1, %c0_2] : memref<16x128xf32, #tpu.memory_space<vmem>>, vector<16x128xf32>
    %cst = arith.constant dense<0.000000e+00> : vector<8x128xf32>
    %2 = tpu.matmul %0, %1, %cst {dimension_numbers = #tpu.dot_dimension_numbers<[1], [0], [0], [1], [0, 0, 1, 1], [], []>} : vector<8x16xf32>, vector<16x128xf32>, vector<8x128xf32> -> vector<8x128xf32>
    %c0_3 = arith.constant 0 : index
    %c0_4 = arith.constant 0 : index
    %3 = vector.load %arg2[%c0_3, %c0_4] : memref<8x4xf32, #tpu.memory_space<vmem>>, vector<8x4xf32>
    %c0_5 = arith.constant 0 : index
    %c0_6 = arith.constant 0 : index
    %4 = vector.load %arg4[%c0_5, %c0_6] : memref<4x128xf32, #tpu.memory_space<vmem>>, vector<4x128xf32>
    %cst_7 = arith.constant dense<0.000000e+00> : vector<8x128xf32>
    %5 = tpu.matmul %3, %4, %cst_7 {dimension_numbers = #tpu.dot_dimension_numbers<[1], [0], [0], [1], [0, 0, 1, 1], [], []>} : vector<8x4xf32>, vector<4x128xf32>, vector<8x128xf32> -> vector<8x128xf32>
    %6 = arith.addf %2, %5 : vector<8x128xf32>
    %c0_8 = arith.constant 0 : index
    %c0_9 = arith.constant 0 : index
    %7 = vector.load %arg5[%c0_8, %c0_9] : memref<1x128xf32, #tpu.memory_space<vmem>>, vector<1x128xf32>
    %8 = vector.broadcast %7 : vector<1x128xf32> to vector<8x128xf32>
    %9 = arith.addf %6, %8 : vector<8x128xf32>
    %cst_10 = arith.constant 0.00999999977 : f32
    %10 = vector.broadcast %cst_10 : f32 to vector<8x128xf32>
    %11 = arith.mulf %10, %9 : vector<8x128xf32>
    %12 = arith.maximumf %9, %11 : vector<8x128xf32>
    %c0_11 = arith.constant 0 : index
    %c0_12 = arith.constant 0 : index
    %13 = vector.load %arg6[%c0_11, %c0_12] : memref<128x128xf32, #tpu.memory_space<vmem>>, vector<128x128xf32>
    %cst_13 = arith.constant dense<0.000000e+00> : vector<8x128xf32>
    %14 = tpu.matmul %12, %13, %cst_13 {dimension_numbers = #tpu.dot_dimension_numbers<[1], [0], [0], [1], [0, 0, 1, 1], [], []>} : vector<8x128xf32>, vector<128x128xf32>, vector<8x128xf32> -> vector<8x128xf32>
    %c0_14 = arith.constant 0 : index
    %c0_15 = arith.constant 0 : index
    %15 = vector.load %arg7[%c0_14, %c0_15] : memref<1x128xf32, #tpu.memory_space<vmem>>, vector<1x128xf32>
    %16 = vector.broadcast %15 : vector<1x128xf32> to vector<8x128xf32>
    %17 = arith.addf %14, %16 : vector<8x128xf32>
    %cst_16 = arith.constant 0.00999999977 : f32
    %18 = vector.broadcast %cst_16 : f32 to vector<8x128xf32>
    %19 = arith.mulf %18, %17 : vector<8x128xf32>
    %20 = arith.maximumf %17, %19 : vector<8x128xf32>
    %c0_17 = arith.constant 0 : index
    %c0_18 = arith.constant 0 : index
    %21 = vector.load %arg8[%c0_17, %c0_18] : memref<128x4xf32, #tpu.memory_space<vmem>>, vector<128x4xf32>
    %cst_19 = arith.constant dense<0.000000e+00> : vector<8x4xf32>
    %22 = tpu.matmul %20, %21, %cst_19 {dimension_numbers = #tpu.dot_dimension_numbers<[1], [0], [0], [1], [0, 0, 1, 1], [], []>} : vector<8x128xf32>, vector<128x4xf32>, vector<8x4xf32> -> vector<8x4xf32>
    %c0_20 = arith.constant 0 : index
    %c0_21 = arith.constant 0 : index
    %23 = vector.load %arg9[%c0_20, %c0_21] : memref<1x4xf32, #tpu.memory_space<vmem>>, vector<1x4xf32>
    %24 = vector.broadcast %23 : vector<1x4xf32> to vector<8x4xf32>
    %25 = arith.addf %22, %24 : vector<8x4xf32>
    %c0_22 = arith.constant 0 : index
    %c0_23 = arith.constant 0 : index
    %26 = vector.load %arg10[%c0_22, %c0_23] : memref<8x4xf32, #tpu.memory_space<vmem>>, vector<8x4xf32>
    tpu.vector_store %arg10[%c0_22, %c0_23], %25 {strides = array<i32>} : memref<8x4xf32, #tpu.memory_space<vmem>>, vector<8x4xf32>,
    return
  }
  func.func @transform_0(%arg0: i32) -> (i32, i32) {
    %c0_i32 = arith.constant 0 : i32
    %c0_i32_0 = arith.constant 0 : i32
    return %arg0, %c0_i32 : i32, i32
  }
  func.func @transform_1(%arg0: i32) -> (i32, i32) {
    %c0_i32 = arith.constant 0 : i32
    %c0_i32_0 = arith.constant 0 : i32
    return %arg0, %c0_i32 : i32, i32
  }
  func.func @transform_2(%arg0: i32) -> (i32, i32) {
    %c0_i32 = arith.constant 0 : i32
    %c0_i32_0 = arith.constant 0 : i32
    %c0_i32_1 = arith.constant 0 : i32
    return %c0_i32, %c0_i32_0 : i32, i32
  }
  func.func @transform_3(%arg0: i32) -> (i32, i32) {
    %c0_i32 = arith.constant 0 : i32
    %c0_i32_0 = arith.constant 0 : i32
    %c0_i32_1 = arith.constant 0 : i32
    return %c0_i32, %c0_i32_0 : i32, i32
  }
  func.func @transform_4(%arg0: i32) -> (i32, i32) {
    %c0_i32 = arith.constant 0 : i32
    %c0_i32_0 = arith.constant 0 : i32
    %c0_i32_1 = arith.constant 0 : i32
    return %c0_i32, %c0_i32_0 : i32, i32
  }
  func.func @transform_5(%arg0: i32) -> (i32, i32) {
    %c0_i32 = arith.constant 0 : i32
    %c0_i32_0 = arith.constant 0 : i32
    %c0_i32_1 = arith.constant 0 : i32
    return %c0_i32, %c0_i32_0 : i32, i32
  }
  func.func @transform_6(%arg0: i32) -> (i32, i32) {
    %c0_i32 = arith.constant 0 : i32
    %c0_i32_0 = arith.constant 0 : i32
    %c0_i32_1 = arith.constant 0 : i32
    return %c0_i32, %c0_i32_0 : i32, i32
  }
  func.func @transform_7(%arg0: i32) -> (i32, i32) {
    %c0_i32 = arith.constant 0 : i32
    %c0_i32_0 = arith.constant 0 : i32
    %c0_i32_1 = arith.constant 0 : i32
    return %c0_i32, %c0_i32_0 : i32, i32
  }
  func.func @transform_8(%arg0: i32) -> (i32, i32) {
    %c0_i32 = arith.constant 0 : i32
    %c0_i32_0 = arith.constant 0 : i32
    %c0_i32_1 = arith.constant 0 : i32
    return %c0_i32, %c0_i32_0 : i32, i32
  }
  func.func @transform_9(%arg0: i32) -> (i32, i32) {
    %c0_i32 = arith.constant 0 : i32
    %c0_i32_0 = arith.constant 0 : i32
    return %arg0, %c0_i32 : i32, i32
  }
}

</mosaic_0001>

<bundles_post_ra>
// kernel: tpu_custom_call.1
= control target key start
LH: loop header
LB: loop body
LE: loop exit
PB: predicated region body
PF: predicated region fallthrough
CT: control target
= control target key end

     0   :  { %14 = vsyncpa [#allocation3], 0  ;;  %s848_s0 = inlined_call_operand.vmem [shape: f32[8,16], index: 0, kind: input, shape index: {}]   ;;  %s849_s1 = inlined_call_operand.vmem [shape: f32[8,4], index: 1, kind: input, shape index: {}]   ;;  %s850_s2 = inlined_call_operand.vmem [shape: f32[16,128], index: 2, kind: input, shape index: {}]   ;;  %s851_s3 = inlined_call_operand.hbm [shape: f32[4,128], index: 3, kind: input, shape index: {}]   ;;  %s852_s4 = inlined_call_operand.hbm [shape: f32[1,128], index: 4, kind: input, shape index: {}]   ;;  %s853_s5 = inlined_call_operand.vmem [shape: f32[128,128], index: 5, kind: input, shape index: {}]   ;;  %s854_s6 = inlined_call_operand.hbm [shape: f32[1,128], index: 6, kind: input, shape index: {}]   ;;  %s855_s7 = inlined_call_operand.vmem [shape: f32[128,4], index: 7, kind: input, shape index: {}]   ;;  %s856_s8 = inlined_call_operand.vmem [shape: f32[1,4], index: 8, kind: input, shape index: {}]   ;;  %s857_s9 = inlined_call_operand.vmem [shape: f32[8,4], index: 9, kind: output, shape index: {}]  }
   0x1   :  { %15 = vsyncpa [#allocation5], 0  ;;  %s625_s30 = smov [#allocation4]   ;;  %s626_s11 = smov [#allocation2]  }
   0x2   :  { %s38_s10 = sshll.u32 %s625_s30, 4  ;;  %s28_s12 = sshll.u32 %s626_s11, 4  ;;  %s39_s10 = int_to_ptr.vmem [resolvable:$true] %s38_s10  ;;  %s29_s12 = int_to_ptr.vmem [resolvable:$true] %s28_s12 }
   0x3   :  { %s569_s13 = scalar_lea.vmem %s39_s10, 16  ;;  %s573_s14 = scalar_lea.vmem %s39_s10, 32 }
   0x4   :  { %p570_p0 = scmp.ne.s32.totalorder %s39_s10, %s569_s13  ;;  %p574_p1 = scmp.lt.s32.totalorder %s39_s10, %s39_s10 }
   0x5   :  { %p575_p2 = scmp.lt.s32.totalorder %s573_s14, %s569_s13 }
   0x7   :  { %p576_p3 = por %p575_p2, %p574_p1 }
   0x9   :  { %p577_p4 = pnand %p576_p3, %p570_p0 }
   0xb   :  { %580 = shalt.err (!%p577_p4)
}
   0xc   :  { %41 = dma.hbm_to_vmem [thread:$0]  %s852_s4, 16, %s39_s10, [#allocation5]  }
   0xd   :  { %s589_s17 = scalar_lea.vmem %s29_s12, 64  ;;  %p594_p6 = scmp.lt.s32.totalorder %s29_s12, %s29_s12 }
   0xe   :  { %p590_p5 = scmp.ne.s32.totalorder %s29_s12, %s589_s17  ;;  %p595_p7 = scmp.lt.s32.totalorder %s589_s17, %s589_s17 }
  0x10   :  { %p596_p8 = por %p595_p7, %p594_p6 }
  0x12   :  { %p597_p9 = pnand %p596_p8, %p590_p5 }
  0x14   :  { %600 = shalt.err (!%p597_p9)
}
  0x15   :  { %31 = dma.hbm_to_vmem [thread:$0]  %s851_s3, 64, %s29_s12, [#allocation3]  }
  0x16   :  { %s627_s20 = smov [#allocation6]  }
  0x17   :  { %s50_s21 = sshll.u32 %s627_s20, 4  ;;  %s51_s21 = int_to_ptr.vmem [resolvable:$true] %s50_s21 }
  0x18   :  { %s609_s22 = scalar_lea.vmem %s51_s21, 16  ;;  %s613_s23 = scalar_lea.vmem %s51_s21, 32 }
  0x19   :  { %p610_p10 = scmp.ne.s32.totalorder %s51_s21, %s609_s22  ;;  %p614_p11 = scmp.lt.s32.totalorder %s51_s21, %s51_s21 }
  0x1a   :  { %p615_p12 = scmp.lt.s32.totalorder %s613_s23, %s609_s22 }
  0x1c   :  { %p616_p13 = por %p615_p12, %p614_p11 }
  0x1e   :  { %p617_p0 = pnand %p616_p13, %p610_p10 }
  0x20   :  { %620 = shalt.err (!%p617_p0)
}
  0x21   :  { %53 = dma.hbm_to_vmem [thread:$0]  %s854_s6, 16, %s51_s21, [#allocation5]  }
  0x22   :  { %621 = dma.done.wait [#allocation3], 64  }
  0x23   :  { %622 = vsyncadd [#allocation3], 4294967232 }
  0x24   :  { %623 = dma.done.wait [#allocation5], 32  }
  0x25   :  { %624 = vsyncadd [#allocation5], 4294967264  ;;  %v628_v0 = vmov 0.0   ;;  %vm629_vm0 = vmmov 0   ;;  %vm76_vm1 = vcmask 1043456   ;;  %vm72_vm2 = vcmask 31744  }
  0x26   :  { %474 = vmatprep.subr.mxu0 %v628_v0  ;;  %479 = vmatprep.subr.mxu1 %v628_v0  ;;  %v71_v1 = vld [vmem:[#allocation2] sm:$0xf]  ;;  %v69_v2 = vld [vmem:[%s850_s2 + $0x8] sm:$0xff]  ;;  %vm150_vm3 = vcmask 130048   ;;  %v249_v6 = vld [vmem:[%s853_s5 + $0x78] sm:$0xff] }
  0x27   :  { %476 = vmatprep.mubr.msk.f32.mxu0 %vm629_vm0, %v628_v0  ;;  %483 = vmatprep.mubr.msk.f32.mxu1 %vm629_vm0, %v628_v0  ;;  %v70_v3 = vld [vmem:[%s849_s1] sm:$0xff]  ;;  %v248_v7 = vld [vmem:[%s853_s5 + $0x70] sm:$0xff]  ;;  %v247_v8 = vld [vmem:[%s853_s5 + $0x68] sm:$0xff] }
  0x28   :  { %475 = vmatpush3.msk.msra.mxu0 %vm76_vm1, %v71_v1  ;;  %480 = vmatpush3.msra.mxu1 %v69_v2  ;;  %v68_v4 = vld [vmem:[%s850_s2] sm:$0xff]  ;;  %v245_v10 = vld [vmem:[%s853_s5 + $0x58] sm:$0xff]  ;;  %v244_v11 = vld [vmem:[%s853_s5 + $0x50] sm:$0xff] }
  0x29   :  { %v67_v5 = vld [vmem:[%s848_s0] sm:$0xff]  ;;  %477 = vmatmul.mubr.msk.f32.vlgmr.msra.gmra.mxu0 %vm72_vm2, %v70_v3  ;;  %481 = vmatprep.subr.mxu1 %v628_v0  ;;  %v243_v12 = vld [vmem:[%s853_s5 + $0x48] sm:$0xff]  ;;  %v241_v14 = vld [vmem:[%s853_s5 + $0x38] sm:$0xff] }
  0x2a   :  { %482 = vmatpush3.msra.mxu1 %v68_v4  ;;  %486 = vmatprep.subr.mxu0 %v628_v0  ;;  %v246_v9 = vld [vmem:[%s853_s5 + $0x60] sm:$0xff]  ;;  %v240_v15 = vld [vmem:[%s853_s5 + $0x30] sm:$0xff]  ;;  %v239_v16 = vld [vmem:[%s853_s5 + $0x28] sm:$0xff] }
  0x2b   :  { %484 = vmatmul.mubr.msk.f32.vlgmr.msra.gmra.mxu1 %vm150_vm3, %v67_v5  ;;  %487 = vmatpush3.msra.mxu0 %v249_v6  ;;  %v242_v13 = vld [vmem:[%s853_s5 + $0x40] sm:$0xff]  ;;  %v237_v18 = vld [vmem:[%s853_s5 + $0x18] sm:$0xff]  ;;  %v236_v19 = vld [vmem:[%s853_s5 + $0x10] sm:$0xff] }
  0x2c   :  { %488 = vmatprep.subr.mxu0 %v628_v0  ;;  %518 = vmatprep.mubr.msk.f32.mxu0 %vm629_vm0, %v628_v0  ;;  %v238_v17 = vld [vmem:[%s853_s5 + $0x20] sm:$0xff]  ;;  %v235_v20 = vld [vmem:[%s853_s5 + $0x8] sm:$0xff]  ;;  %v344_v22 = vld [vmem:[%s855_s7 + $0x78] sm:$0xff] }
  0x2d   :  { %489 = vmatpush3.msra.mxu0 %v248_v7  ;;  %521 = vmatprep.subr.mxu1 %v628_v0  ;;  %v234_v21 = vld [vmem:[%s853_s5] sm:$0xff]  ;;  %v343_v23 = vld [vmem:[%s855_s7 + $0x70] sm:$0xff]  ;;  %v342_v24 = vld [vmem:[%s855_s7 + $0x68] sm:$0xff] }
  0x2e   :  { %490 = vmatprep.subr.mxu0 %v628_v0  ;;  %553 = vmatprep.mubr.msk.f32.mxu1 %vm629_vm0, %v628_v0  ;;  %v341_v25 = vld [vmem:[%s855_s7 + $0x60] sm:$0xff]  ;;  %v340_v26 = vld [vmem:[%s855_s7 + $0x58] sm:$0xff]  ;;  %v339_v27 = vld [vmem:[%s855_s7 + $0x50] sm:$0xff] }
  0x2f   :  { %491 = vmatpush3.msra.mxu0 %v247_v8  ;;  %522 = vmatpush3.msra.mxu1 %v344_v22  ;;  %v338_v28 = vld [vmem:[%s855_s7 + $0x48] sm:$0xff]  ;;  %v337_v29 = vld [vmem:[%s855_s7 + $0x40] sm:$0xff]  ;;  %v336_v30 = vld [vmem:[%s855_s7 + $0x38] sm:$0xff] }
  0x30   :  { %492 = vmatprep.subr.mxu0 %v628_v0  ;;  %523 = vmatprep.subr.mxu1 %v628_v0  ;;  %v335_v31 = vld [vmem:[%s855_s7 + $0x30] sm:$0xff]  ;;  %v334_v32 = vld [vmem:[%s855_s7 + $0x28] sm:$0xff]  ;;  %v333_v33 = vld [vmem:[%s855_s7 + $0x20] sm:$0xff] }
  0x31   :  { %493 = vmatpush3.msra.mxu0 %v246_v9  ;;  %524 = vmatpush3.msra.mxu1 %v343_v23  ;;  %v432_v37 = vld [vmem:[#allocation4] ss:$0 sm:$0xff]  ;;  %v332_v43 = vld [vmem:[%s855_s7 + $0x18] sm:$0xff]  ;;  %v331_v44 = vld [vmem:[%s855_s7 + $0x10] sm:$0xff] }
  0x32   :  { %494 = vmatprep.subr.mxu0 %v628_v0  ;;  %525 = vmatprep.subr.mxu1 %v628_v0  ;;  %v330_v45 = vld [vmem:[%s855_s7 + $0x8] sm:$0xff]  ;;  %v329_v46 = vld [vmem:[%s855_s7] sm:$0xff] }
  0x33   :  { %495 = vmatpush3.msra.mxu0 %v245_v10  ;;  %526 = vmatpush3.msra.mxu1 %v342_v24  ;;  %v433_v47 = vld [vmem:[#allocation6] ss:$0 sm:$0xff]  ;;  %v434_v53 = vld [vmem:[%s856_s8] ss:$0 sm:$0xff] }
  0x34   :  { %496 = vmatprep.subr.mxu0 %v628_v0  ;;  %527 = vmatprep.subr.mxu1 %v628_v0 }
  0x35   :  { %497 = vmatpush3.msra.mxu0 %v244_v11  ;;  %528 = vmatpush3.msra.mxu1 %v341_v25 }
  0x36   :  { %498 = vmatprep.subr.mxu0 %v628_v0  ;;  %529 = vmatprep.subr.mxu1 %v628_v0 }
  0x37   :  { %499 = vmatpush3.msra.mxu0 %v243_v12  ;;  %530 = vmatpush3.msra.mxu1 %v340_v26 }
  0x38   :  { %500 = vmatprep.subr.mxu0 %v628_v0  ;;  %531 = vmatprep.subr.mxu1 %v628_v0 }
  0x39   :  { %501 = vmatpush3.msra.mxu0 %v242_v13  ;;  %532 = vmatpush3.msra.mxu1 %v339_v27 }
  0x3a   :  { %502 = vmatprep.subr.mxu0 %v628_v0  ;;  %533 = vmatprep.subr.mxu1 %v628_v0 }
  0x3b   :  { %503 = vmatpush3.msra.mxu0 %v241_v14  ;;  %534 = vmatpush3.msra.mxu1 %v338_v28 }
  0x3c   :  { %504 = vmatprep.subr.mxu0 %v628_v0  ;;  %535 = vmatprep.subr.mxu1 %v628_v0 }
  0x3d   :  { %505 = vmatpush3.msra.mxu0 %v240_v15  ;;  %536 = vmatpush3.msra.mxu1 %v337_v29 }
  0x3e   :  { %506 = vmatprep.subr.mxu0 %v628_v0  ;;  %537 = vmatprep.subr.mxu1 %v628_v0 }
  0x3f   :  { %507 = vmatpush3.msra.mxu0 %v239_v16  ;;  %538 = vmatpush3.msra.mxu1 %v336_v30 }
  0x40   :  { %508 = vmatprep.subr.mxu0 %v628_v0  ;;  %539 = vmatprep.subr.mxu1 %v628_v0 }
  0x41   :  { %509 = vmatpush3.msra.mxu0 %v238_v17  ;;  %540 = vmatpush3.msra.mxu1 %v335_v31 }
  0x42   :  { %510 = vmatprep.subr.mxu0 %v628_v0  ;;  %541 = vmatprep.subr.mxu1 %v628_v0 }
  0x43   :  { %511 = vmatpush3.msra.mxu0 %v237_v18  ;;  %542 = vmatpush3.msra.mxu1 %v334_v32 }
  0x44   :  { %512 = vmatprep.subr.mxu0 %v628_v0  ;;  %543 = vmatprep.subr.mxu1 %v628_v0 }
  0x45   :  { %513 = vmatpush3.msra.mxu0 %v236_v19  ;;  %544 = vmatpush3.msra.mxu1 %v333_v33 }
  0x46   :  { %514 = vmatprep.subr.mxu0 %v628_v0  ;;  %545 = vmatprep.subr.mxu1 %v628_v0 }
  0x47   :  { %515 = vmatpush3.msra.mxu0 %v235_v20  ;;  %546 = vmatpush3.msra.mxu1 %v332_v43 }
  0x48   :  { %516 = vmatprep.subr.mxu0 %v628_v0  ;;  %547 = vmatprep.subr.mxu1 %v628_v0 }
  0x49   :  { %517 = vmatpush3.msra.mxu0 %v234_v21  ;;  %548 = vmatpush3.msra.mxu1 %v331_v44 }
  0x4a   :  { %549 = vmatprep.subr.mxu1 %v628_v0 }
  0x4b   :  { %550 = vmatpush3.msra.mxu1 %v330_v45 }
  0x4c   :  { %551 = vmatprep.subr.mxu1 %v628_v0 }
  0x4d   :  { %552 = vmatpush3.msra.mxu1 %v329_v46 }
  0xe9   :  { %v146_v34 = vpop.f32.mrf.mxu0 }
  0xeb   :  { %v478_v35 = vpop.f32.mrf.mxu0  ;;  %v220_v36 = vpop.f32.mrf.mxu1 }
  0xec   :  { %v221_v38 = vadd.f32 %v220_v36, %v146_v34 }
  0xed   :  { %v485_v39 = vpop.f32.mrf.mxu1 }
  0xee   :  { %v231_v40 = vadd.f32 %v432_v37, %v221_v38 }
  0xf0   :  { %v232_v41 = vmul.f32 0.01, %v231_v40 }
  0xf2   :  { %v233_v42 = vmax.f32 %v231_v40, %v232_v41 }
  0xf4   :  { %519 = vmatmul.mubr.f32.vlgmr.msra.gmra.mxu0 %v233_v42 }
 0x1b4   :  { %v323_v48 = vpop.f32.mrf.mxu0 }
 0x1b5   :  { %v324_v49 = vadd.f32 %v433_v47, %v323_v48 }
 0x1b6   :  { %v520_v50 = vpop.f32.mrf.mxu0 }
 0x1b7   :  { %v327_v51 = vmul.f32 0.01, %v324_v49 }
 0x1b9   :  { %v328_v52 = vmax.f32 %v324_v49, %v327_v51 }
 0x1bb   :  { %554 = vmatmul.mubr.f32.vlgmr.msra.gmra.mxu1 %v328_v52 }
 0x27b   :  { %v418_v54 = vpop.f32.mrf.mxu1 }
 0x27c   :  { %v419_v55 = vadd.f32 %v434_v53, %v418_v54 }
 0x27d   :  { %v555_v56 = vpop.f32.mrf.mxu1 }
 0x27e   :  { %422 = vst.msk [vmem:[%s857_s9] sm:$0xff] %vm72_vm2, %v419_v55 }
 0x27f   :  { %427 = vsyncpa [#allocation3], 1 }
 0x280   :  { %428 = vsyncpa [#allocation5], 1 }

</bundles_post_ra>
